<compile_context>
chip_gen: v7x
topology: tpu7x:2x2x1
jax: 0.10.0
libtpu: 0.0.40
codegen_flags: <defaults>
</compile_context>

<pallas_src>
import math
from functools import partial

import jax
import jax.numpy as jnp
from jax.experimental import pallas as pl
from jax.experimental.pallas import tpu as pltpu


def _round_up(x, m):
    return (x + m - 1) // m * m


def _sigmoid_via_tanh(m):
    # sigmoid(m) == 0.5 * (tanh(m / 2) + 1): one EUP op instead of exp+recip.
    return 0.5 * (jnp.tanh(0.5 * m) + 1.0)


def _pick_tile(dim, align, cap):
    """Largest tile in {cap, cap/2, ..., align} whose padding waste is small.

    cap must be align * 2^k so every candidate stays `align`-aligned.
    """
    waste_budget = max(align, dim // 8)
    t = cap
    while t > align:
        if _round_up(dim, t) - dim <= waste_budget:
            return t
        t //= 2
    return align


# ---------------------------------------------------------------------------
# Kernel bodies
# ---------------------------------------------------------------------------
def _accumulate_or_store(partial_f32, o_ref, scratch):
    """Shared epilogue: k-reduction accumulate (if scratch) or direct store."""
    if scratch:
        (acc_ref,) = scratch

        @pl.when(pl.program_id(2) == 0)
        def _init():
            acc_ref[...] = jnp.zeros_like(acc_ref)

        acc_ref[...] += partial_f32

        @pl.when(pl.program_id(2) == pl.num_programs(2) - 1)
        def _finalize():
            o_ref[...] = acc_ref[...].astype(o_ref.dtype)
    else:
        o_ref[...] = partial_f32.astype(o_ref.dtype)


def _nac_fused_kernel(x_ref, w_hat_ref, m_hat_ref, o_ref, *scratch,
                      operand_dtype):
    """Fused weight-transform + matmul (single batch tile regime).

    x tile (tm, tk); W_hat/M_hat tiles (tn, tk).  The effective weight tile is
    computed in f32 on VPU/EUP, cast to operand_dtype, and contracted on the
    shared in_dim axis with f32 MXU accumulation.  Each weight tile is only
    touched once (n_bm == 1), so the implied RHS transpose is a one-time cost.
    """
    w = jnp.tanh(w_hat_ref[...]) * _sigmoid_via_tanh(m_hat_ref[...])
    x = x_ref[...].astype(operand_dtype)
    p = jax.lax.dot_general(
        x,
        w.astype(operand_dtype),
        dimension_numbers=(((1,), (1,)), ((), ())),
        preferred_element_type=jnp.float32,
    )
    _accumulate_or_store(p, o_ref, scratch)


def _nac_weight_t_kernel(w_hat_ref, m_hat_ref, wt_ref):
    """W_eff = tanh(W_hat) * sigmoid(M_hat), stored TRANSPOSED ([in, out]).

    Runs once; the transpose is amortized over all batch tiles so the matmul
    kernel never spends the MXU's issue slot on per-step vxpose.
    """
    w = jnp.tanh(w_hat_ref[...]) * _sigmoid_via_tanh(m_hat_ref[...])
    wt_ref[...] = w.T.astype(wt_ref.dtype)


def _nac_matmul_kernel(x_ref, wt_ref, o_ref, *scratch, operand_dtype):
    """Canonical (tm, tk) @ (tk, tn) matmul with f32 accumulation."""
    x = x_ref[...].astype(operand_dtype)
    p = jnp.dot(x, wt_ref[...], preferred_element_type=jnp.float32)
    _accumulate_or_store(p, o_ref, scratch)


# ---------------------------------------------------------------------------
# Wrapper
# ---------------------------------------------------------------------------
def nac_forward(x, w_hat, m_hat, *, operand_dtype=jnp.bfloat16):
    """NeuralAccumulatorCell forward: y = x @ (tanh(W_hat)*sigmoid(M_hat)).T

    x:     [batch, in_dim]
    w_hat: [out_dim, in_dim]
    m_hat: [out_dim, in_dim]
    returns [batch, out_dim] in x.dtype (always f32-accumulated).
    """
    batch, in_dim = x.shape
    out_dim, in_dim_w = w_hat.shape
    assert in_dim_w == in_dim and m_hat.shape == w_hat.shape

    # ---- tile selection ----------------------------------------------------
    # 16-row alignment keeps bf16 sublane packing full; 128 on lane dims.
    tm = _pick_tile(batch, 16, 512)
    tn = _pick_tile(out_dim, 128, 512)
    tk = _pick_tile(in_dim, 128, 1024)

    batch_p = _round_up(batch, tm)
    out_p = _round_up(out_dim, tn)
    in_p = _round_up(in_dim, tk)

    # v7x has 2 TensorCores: ensure a "parallel" grid axis has >= 2 blocks
    # whenever alignment allows, so the second core is not idle.
    if batch_p // tm == 1 and out_p // tn == 1:
        if tn >= 256 and tn % 256 == 0:
            tn //= 2
        elif tm >= 32 and tm % 32 == 0:
            tm //= 2

    n_bm = batch_p // tm
    n_bn = out_p // tn
    n_bk = in_p // tk

    # ---- generation-aware VMEM budget ---------------------------------------
    try:
        vmem_cap = pltpu.get_tpu_info().vmem_capacity_bytes
    except Exception:  # conservative fallback
        vmem_cap = 64 * 1024 * 1024
    # ~48 MiB on v7x (64 MiB physical), ~96 MiB on v5e/v6e (128 MiB).
    vmem_limit = int(min(vmem_cap * 3 // 4, 100 * 1024 * 1024))

    op_bytes = jnp.dtype(operand_dtype).itemsize
    x_bytes = jnp.dtype(x.dtype).itemsize

    # Pre-cast x in the wrapper only if it is re-read per output-column tile;
    # otherwise cast in-kernel (saves a separate, un-hidden XLA pass over x).
    cast_x_in_wrapper = n_bn > 1 and jnp.dtype(x.dtype) != jnp.dtype(operand_dtype)

    # Zero-pad.  tanh(0)*sigmoid(0) == 0, so padded in_dim columns contribute
    # exactly zero and padded out_dim rows are sliced away at the end.
    x_p = jnp.pad(x, ((0, batch_p - batch), (0, in_p - in_dim)))
    if cast_x_in_wrapper:
        x_p = x_p.astype(operand_dtype)
    w_hat_p = jnp.pad(w_hat, ((0, out_p - out_dim), (0, in_p - in_dim)))
    m_hat_p = jnp.pad(m_hat, ((0, out_p - out_dim), (0, in_p - in_dim)))

    # Accumulator only needed when the reduction axis has more than one step.
    matmul_scratch = [] if n_bk == 1 else [pltpu.VMEM((tm, tn), jnp.float32)]
    xin_bytes = op_bytes if cast_x_in_wrapper else x_bytes

    if n_bm == 1:
        # -------- fused path: transform + matmul in one kernel ---------------
        y_p = pl.pallas_call(
            partial(_nac_fused_kernel, operand_dtype=operand_dtype),
            out_shape=jax.ShapeDtypeStruct((batch_p, out_p), x.dtype),
            grid_spec=pltpu.PrefetchScalarGridSpec(
                num_scalar_prefetch=0,
                grid=(n_bm, n_bn, n_bk),
                in_specs=[
                    pl.BlockSpec((tm, tk), lambda i, j, k: (i, k)),
                    pl.BlockSpec((tn, tk), lambda i, j, k: (j, k)),
                    pl.BlockSpec((tn, tk), lambda i, j, k: (j, k)),
                ],
                out_specs=pl.BlockSpec((tm, tn), lambda i, j, k: (i, j)),
                scratch_shapes=matmul_scratch,
            ),
            compiler_params=pltpu.CompilerParams(
                dimension_semantics=("parallel", "parallel", "arbitrary"),
                vmem_limit_bytes=vmem_limit,
            ),
            cost_estimate=pl.CostEstimate(
                flops=2 * batch_p * out_p * in_p + 3 * out_p * in_p,
                transcendentals=2 * out_p * in_p,
                bytes_accessed=batch_p * in_p * xin_bytes
                + 2 * out_p * in_p * 4
                + batch_p * out_p * x_bytes,
            ),
        )(x_p, w_hat_p, m_hat_p)
    else:
        # -------- split path --------------------------------------------------
        # Kernel 1: one-time weight transform, stored pre-transposed.
        w_t = pl.pallas_call(
            _nac_weight_t_kernel,
            out_shape=jax.ShapeDtypeStruct((in_p, out_p), operand_dtype),
            grid_spec=pltpu.PrefetchScalarGridSpec(
                num_scalar_prefetch=0,
                grid=(n_bn, n_bk),
                in_specs=[
                    pl.BlockSpec((tn, tk), lambda j, k: (j, k)),
                    pl.BlockSpec((tn, tk), lambda j, k: (j, k)),
                ],
                out_specs=pl.BlockSpec((tk, tn), lambda j, k: (k, j)),
            ),
            compiler_params=pltpu.CompilerParams(
                dimension_semantics=("parallel", "parallel"),
                vmem_limit_bytes=vmem_limit,
            ),
            cost_estimate=pl.CostEstimate(
                flops=3 * out_p * in_p,
                transcendentals=2 * out_p * in_p,
                bytes_accessed=2 * out_p * in_p * 4 + out_p * in_p * op_bytes,
            ),
        )(w_hat_p, m_hat_p)

        # Kernel 2: canonical tiled matmul with f32 accumulation.
        y_p = pl.pallas_call(
            partial(_nac_matmul_kernel, operand_dtype=operand_dtype),
            out_shape=jax.ShapeDtypeStruct((batch_p, out_p), x.dtype),
            grid_spec=pltpu.PrefetchScalarGridSpec(
                num_scalar_prefetch=0,
                grid=(n_bm, n_bn, n_bk),
                in_specs=[
                    pl.BlockSpec((tm, tk), lambda i, j, k: (i, k)),
                    pl.BlockSpec((tk, tn), lambda i, j, k: (k, j)),
                ],
                out_specs=pl.BlockSpec((tm, tn), lambda i, j, k: (i, j)),
                scratch_shapes=matmul_scratch,
            ),
            compiler_params=pltpu.CompilerParams(
                dimension_semantics=("parallel", "parallel", "arbitrary"),
                vmem_limit_bytes=vmem_limit,
            ),
            cost_estimate=pl.CostEstimate(
                flops=2 * batch_p * out_p * in_p,
                transcendentals=0,
                bytes_accessed=batch_p * in_p * xin_bytes
                + out_p * in_p * op_bytes
                + batch_p * out_p * x_bytes,
            ),
        )(x_p, w_t)

    # Slice away padding (lane-dense padded output; valid region returned).
    return y_p[:batch, :out_dim]


def kaiming_uniform(key, out_dim, in_dim, dtype=jnp.float32):
    # nn.init.kaiming_uniform_ defaults (a=0, fan_in): bound = sqrt(6 / fan_in)
    bound = math.sqrt(6.0 / in_dim)
    return jax.random.uniform(
        key, (out_dim, in_dim), dtype=dtype, minval=-bound, maxval=bound
    )


def _reference_bf16(x, w_hat, m_hat, operand_dtype):
    # Mirrors the kernel numerics: operand-dtype inputs, f32 accumulation.
    w = (jnp.tanh(w_hat) * _sigmoid_via_tanh(m_hat)).astype(operand_dtype)
    return jax.lax.dot_general(
        x.astype(operand_dtype),
        w,
        dimension_numbers=(((1,), (1,)), ((), ())),
        preferred_element_type=jnp.float32,
    ).astype(x.dtype)


if __name__ == "__main__":
    def run_case(batch, in_dim, out_dim, key):
        kx, kw, km = jax.random.split(key, 3)
        x = jax.random.normal(kx, (batch, in_dim), dtype=jnp.float32)
        w_hat = kaiming_uniform(kw, out_dim, in_dim)
        m_hat = kaiming_uniform(km, out_dim, in_dim)

        y = nac_forward(x, w_hat, m_hat)
        jax.block_until_ready(y)
        assert y.shape == (batch, out_dim)

        # Tight check vs a reference mirroring the kernel's numerics.
        y_ref = _reference_bf16(x, w_hat, m_hat, jnp.bfloat16)
        assert jnp.allclose(y, y_ref, atol=2e-2, rtol=2e-2)

        # Loose check vs the full-f32 PyTorch-equivalent reference.
        y_f32 = x @ (jnp.tanh(w_hat) * jax.nn.sigmoid(m_hat)).T
        assert jnp.allclose(y, y_f32, atol=5e-2, rtol=5e-2)

    key = jax.random.PRNGKey(0)
    k1, k2 = jax.random.split(key)

    # Module-scale small shape -> fused single-kernel path.
    run_case(batch=8, in_dim=32, out_dim=16, key=k1)
    # Larger batch -> split path (one-time transposed weight + tiled matmul),
    # also exercises non-multiple padding on every dimension.
    run_case(batch=200, in_dim=160, out_dim=96, key=k2)

    print("KERNEL_OK")
</pallas_src>

<mosaic_0001>
module attributes {stable_mosaic.version = 11 : i64} {
  func.func @_nac_fused_kernel(%arg0: i32, %arg1: i32, %arg2: i32, %arg3: memref<16x128xf32, #tpu.memory_space<vmem>>, %arg4: memref<128x128xf32, #tpu.memory_space<vmem>>, %arg5: memref<128x128xf32, #tpu.memory_space<vmem>>, %arg6: memref<16x128xf32, #tpu.memory_space<vmem>>) attributes {dimension_semantics = [#tpu.dimension_semantics<parallel>, #tpu.dimension_semantics<parallel>, #tpu.dimension_semantics<arbitrary>], iteration_bounds = array<i64: 1, 1, 1>, scalar_prefetch = 0 : i64, scratch_operands = 0 : i64, tpu.core_type = #tpu.core_type<tc>, window_params = [{transform_indices = @transform_0, window_bounds = array<i64: 16, 128>}, {transform_indices = @transform_1, window_bounds = array<i64: 128, 128>}, {transform_indices = @transform_2, window_bounds = array<i64: 128, 128>}, {transform_indices = @transform_3, window_bounds = array<i64: 16, 128>}]} {
    %c0 = arith.constant 0 : index
    %c0_0 = arith.constant 0 : index
    %0 = vector.load %arg4[%c0, %c0_0] : memref<128x128xf32, #tpu.memory_space<vmem>>, vector<128x128xf32>
    %1 = math.tanh %0 : vector<128x128xf32>
    %c0_1 = arith.constant 0 : index
    %c0_2 = arith.constant 0 : index
    %2 = vector.load %arg5[%c0_1, %c0_2] : memref<128x128xf32, #tpu.memory_space<vmem>>, vector<128x128xf32>
    %cst = arith.constant 5.000000e-01 : f32
    %3 = vector.broadcast %cst : f32 to vector<128x128xf32>
    %4 = arith.mulf %3, %2 : vector<128x128xf32>
    %5 = math.tanh %4 : vector<128x128xf32>
    %cst_3 = arith.constant 1.000000e+00 : f32
    %6 = vector.broadcast %cst_3 : f32 to vector<128x128xf32>
    %7 = arith.addf %5, %6 : vector<128x128xf32>
    %cst_4 = arith.constant 5.000000e-01 : f32
    %8 = vector.broadcast %cst_4 : f32 to vector<128x128xf32>
    %9 = arith.mulf %8, %7 : vector<128x128xf32>
    %10 = arith.mulf %1, %9 : vector<128x128xf32>
    %c0_5 = arith.constant 0 : index
    %c0_6 = arith.constant 0 : index
    %11 = vector.load %arg3[%c0_5, %c0_6] : memref<16x128xf32, #tpu.memory_space<vmem>>, vector<16x128xf32>
    %12 = arith.truncf %11 : vector<16x128xf32> to vector<16x128xbf16>
    %13 = arith.truncf %10 : vector<128x128xf32> to vector<128x128xbf16>
    %cst_7 = arith.constant dense<0.000000e+00> : vector<16x128xf32>
    %14 = tpu.matmul %12, %13, %cst_7 {dimension_numbers = #tpu.dot_dimension_numbers<[1], [1], [0], [0], [0, 0, 1, 0], [], []>} : vector<16x128xbf16>, vector<128x128xbf16>, vector<16x128xf32> -> vector<16x128xf32>
    %c0_8 = arith.constant 0 : index
    %c0_9 = arith.constant 0 : index
    %15 = vector.load %arg6[%c0_8, %c0_9] : memref<16x128xf32, #tpu.memory_space<vmem>>, vector<16x128xf32>
    tpu.vector_store %arg6[%c0_8, %c0_9], %14 {strides = array<i32>} : memref<16x128xf32, #tpu.memory_space<vmem>>, vector<16x128xf32>,
    return
  }
  func.func @transform_0(%arg0: i32, %arg1: i32, %arg2: i32) -> (i32, i32) {
    %c0_i32 = arith.constant 0 : i32
    return %arg0, %arg2 : i32, i32
  }
  func.func @transform_1(%arg0: i32, %arg1: i32, %arg2: i32) -> (i32, i32) {
    %c0_i32 = arith.constant 0 : i32
    return %arg1, %arg2 : i32, i32
  }
  func.func @transform_2(%arg0: i32, %arg1: i32, %arg2: i32) -> (i32, i32) {
    %c0_i32 = arith.constant 0 : i32
    return %arg1, %arg2 : i32, i32
  }
  func.func @transform_3(%arg0: i32, %arg1: i32, %arg2: i32) -> (i32, i32) {
    %c0_i32 = arith.constant 0 : i32
    return %arg0, %arg1 : i32, i32
  }
}

</mosaic_0001>

<bundles_post_ra>
// kernel: tpu_custom_call.1
= control target key start
LH: loop header
LB: loop body
LE: loop exit
PB: predicated region body
PF: predicated region fallthrough
CT: control target
= control target key end

     0   :  { %8 = vsyncpa [#allocation3], 0  ;;  %s556_s0 = inlined_call_operand.hbm [shape: f32[16,128], index: 0, kind: input, shape index: {}]   ;;  %s557_s1 = inlined_call_operand.hbm [shape: f32[128,128], index: 1, kind: input, shape index: {}]   ;;  %s558_s2 = inlined_call_operand.hbm [shape: f32[128,128], index: 2, kind: input, shape index: {}]   ;;  %s559_s3 = inlined_call_operand.hbm [shape: f32[16,128], index: 3, kind: output, shape index: {}]  }
   0x1   :  { %9 = vsyncpa [#allocation6], 0 }
   0x2   :  { %10 = vsyncpa [#allocation4], 0  ;;  %s452_s12 = smov [#allocation5]   ;;  %s453_s14 = smov [#allocation2]  }
   0x3   :  { %s28_s13 = sshll.u32 %s452_s12, 4  ;;  %s16_s15 = sshll.u32 %s453_s14, 4  ;;  %s29_s13 = int_to_ptr.vmem [resolvable:$true] %s28_s13  ;;  %s480_s15 = int_to_ptr.vmem [resolvable:$true] %s16_s15 }
   0x4   :  { %s358_s18 = scalar_lea.hbm %s557_s1, 2048 }
   0x5   :  { %p359_p0 = scmp.ne.s32.totalorder %s557_s1, %s358_s18  ;;  %p362_p1 = scmp.lt.u32.totalorder %s358_s18, %s557_s1 }
   0x7   :  { %p364_p2 = pnand %p362_p1, %p359_p0 }
   0x9   :  { %367 = shalt.err (!%p364_p2)
}
   0xa   :  { %s368_s23 = scalar_lea.vmem %s29_s13, 2048  ;;  %p373_p4 = scmp.lt.s32.totalorder %s29_s13, %s29_s13 }
   0xb   :  { %p369_p3 = scmp.ne.s32.totalorder %s29_s13, %s368_s23  ;;  %p374_p5 = scmp.lt.s32.totalorder %s368_s23, %s368_s23 }
   0xd   :  { %p375_p6 = por %p374_p5, %p373_p4 }
   0xf   :  { %p376_p7 = pnand %p375_p6, %p369_p3 }
  0x11   :  { %379 = shalt.err (!%p376_p7)
}
  0x12   :  { %s454_s24 = smov 128   ;;  %s455_s25 = smov 8  }
  0x13   :  { %34 = dma.hbm_to_vmem [thread:$0]  %s557_s1, 2048, %s29_s13, [#allocation6], %s454_s24, %s454_s24, %s455_s25  }
  0x14   :  { %s380_s30 = scalar_lea.hbm %s556_s0, 256 }
  0x15   :  { %p381_p8 = scmp.ne.s32.totalorder %s556_s0, %s380_s30  ;;  %p384_p9 = scmp.lt.u32.totalorder %s380_s30, %s556_s0 }
  0x17   :  { %p386_p10 = pnand %p384_p9, %p381_p8 }
  0x19   :  { %389 = shalt.err (!%p386_p10)
}
  0x1a   :  { %s390_s8 = scalar_lea.vmem %s480_s15, 256  ;;  %p395_p12 = scmp.lt.s32.totalorder %s480_s15, %s480_s15 }
  0x1b   :  { %p391_p11 = scmp.ne.s32.totalorder %s480_s15, %s390_s8  ;;  %p396_p13 = scmp.lt.s32.totalorder %s390_s8, %s390_s8 }
  0x1d   :  { %p397_p0 = por %p396_p13, %p395_p12 }
  0x1f   :  { %p398_p1 = pnand %p397_p0, %p391_p11 }
  0x21   :  { %401 = shalt.err (!%p398_p1)
}
  0x22   :  { %22 = dma.hbm_to_vmem [thread:$0]  %s556_s0, 256, %s480_s15, [#allocation3], %s454_s24, %s454_s24, %s455_s25  }
  0x23   :  { %s456_s10 = smov [#allocation7]   ;;  %s402_s14 = scalar_lea.hbm %s558_s2, 2048 }
  0x24   :  { %s40_s11 = sshll.u32 %s456_s10, 4  ;;  %p403_p2 = scmp.ne.s32.totalorder %s558_s2, %s402_s14  ;;  %s41_s11 = int_to_ptr.vmem [resolvable:$true] %s40_s11 }
  0x25   :  { %p406_p3 = scmp.lt.u32.totalorder %s402_s14, %s558_s2 }
  0x27   :  { %p408_p4 = pnand %p406_p3, %p403_p2 }
  0x29   :  { %411 = shalt.err (!%p408_p4)
}
  0x2a   :  { %s412_s20 = scalar_lea.vmem %s41_s11, 2048  ;;  %p417_p6 = scmp.lt.s32.totalorder %s41_s11, %s41_s11 }
  0x2b   :  { %p413_p5 = scmp.ne.s32.totalorder %s41_s11, %s412_s20  ;;  %p418_p7 = scmp.lt.s32.totalorder %s412_s20, %s412_s20 }
  0x2d   :  { %p419_p8 = por %p418_p7, %p417_p6 }
  0x2f   :  { %p420_p9 = pnand %p419_p8, %p413_p5 }
  0x31   :  { %423 = shalt.err (!%p420_p9)
}
  0x32   :  { %46 = dma.hbm_to_vmem [thread:$0]  %s558_s2, 2048, %s41_s11, [#allocation6], %s454_s24, %s454_s24, %s455_s25  }
  0x33   :  { %446 = dma.done.wait [#allocation3], 256  }
  0x34   :  { %447 = vsyncadd [#allocation3], 4294967040 }
  0x35   :  { %448 = dma.done.wait [#allocation6], 4096  }
  0x36   :  { %449 = vsyncadd [#allocation6], 4294963200  ;;  %v457_v0 = vmov 0.0   ;;  %vm458_vm0 = vmmov 0   ;;  %v89_v1 = vld [vmem:[#allocation7] sm:$0xff]  ;;  %v90_v2 = vld [vmem:[#allocation7 + $0x8] sm:$0xff] }
  0x37   :  { %266 = vmatprep.subr.bf16.mxu0 %v457_v0  ;;  %282 = vmatprep.mubr.msk.bf16.mxu0 %vm458_vm0, %v457_v0  ;;  %v105_v3 = vmul.f32 0.5, %v89_v1  ;;  %v57_v4 = vld [vmem:[#allocation5] sm:$0xff]  ;;  %v106_v5 = vmul.f32 0.5, %v90_v2  ;;  %v91_v6 = vld [vmem:[#allocation7 + $0x10] sm:$0xff]  ;;  %v92_v7 = vld [vmem:[#allocation7 + $0x18] sm:$0xff]  ;;  %s459_s2 = smov [#allocation8]  }
  0x38   :  { %v58_v8 = vld [vmem:[#allocation5 + $0x8] sm:$0xff]  ;;  %v107_v9 = vmul.f32 0.5, %v91_v6  ;;  %v108_v10 = vmul.f32 0.5, %v92_v7  ;;  %v93_v11 = vld [vmem:[#allocation7 + $0x20] sm:$0xff]  ;;  %v59_v13 = vld [vmem:[#allocation5 + $0x10] sm:$0xff]  ;;  %s244_s21 = sshll.u32 %s459_s2, 4  ;;  %s245_s21 = int_to_ptr.vmem [resolvable:$true] %s244_s21 }
  0x39   :  { %294 = vtanh.f32 %v105_v3  ;;  %v94_v12 = vld [vmem:[#allocation7 + $0x28] sm:$0xff]  ;;  %v60_v14 = vld [vmem:[#allocation5 + $0x18] sm:$0xff]  ;;  %v109_v15 = vmul.f32 0.5, %v93_v11  ;;  %v95_v17 = vld [vmem:[#allocation7 + $0x30] sm:$0xff]  ;;  %s424_s22 = scalar_lea.vmem %s245_s21, 256  ;;  %p429_p11 = scmp.lt.s32.totalorder %s245_s21, %s245_s21 }
  0x3a   :  { %296 = vtanh.f32 %v106_v5  ;;  %v110_v16 = vmul.f32 0.5, %v94_v12  ;;  %v96_v18 = vld [vmem:[#allocation7 + $0x38] sm:$0xff]  ;;  %v61_v19 = vld [vmem:[#allocation5 + $0x20] sm:$0xff]  ;;  %v62_v21 = vld [vmem:[#allocation5 + $0x28] sm:$0xff]  ;;  %v111_v22 = vmul.f32 0.5, %v95_v17  ;;  %p425_p10 = scmp.ne.s32.totalorder %s245_s21, %s424_s22  ;;  %p430_p12 = scmp.lt.s32.totalorder %s424_s22, %s424_s22 }
  0x3b   :  { %298 = vtanh.f32 %v57_v4  ;;  %v112_v25 = vmul.f32 0.5, %v96_v18  ;;  %v97_v35 = vld [vmem:[#allocation7 + $0x40] sm:$0xff]  ;;  %v63_v39 = vld [vmem:[#allocation5 + $0x30] sm:$0xff]  ;;  %v98_v40 = vld [vmem:[#allocation7 + $0x48] sm:$0xff] }
  0x3c   :  { %300 = vtanh.f32 %v58_v8  ;;  %v64_v46 = vld [vmem:[#allocation5 + $0x38] sm:$0xff]  ;;  %v113_v47 = vmul.f32 0.5, %v97_v35  ;;  %v114_v49 = vmul.f32 0.5, %v98_v40  ;;  %v99_v56 = vld [vmem:[#allocation7 + $0x50] sm:$0xff]  ;;  %v65_v61 = vld [vmem:[#allocation5 + $0x40] sm:$0xff]  ;;  %p431_p13 = por %p430_p12, %p429_p11 }
  0x3d   :  { %302 = vtanh.f32 %v107_v9  ;;  %v100_v62 = vld [vmem:[#allocation7 + $0x58] sm:$0xff]  ;;  %v66_v1 = vld [vmem:[#allocation5 + $0x48] sm:$0xff]  ;;  %v115_v2 = vmul.f32 0.5, %v99_v56 }
  0x3e   :  { %304 = vtanh.f32 %v108_v10  ;;  %v116_v3 = vmul.f32 0.5, %v100_v62  ;;  %v101_v10 = vld [vmem:[#allocation7 + $0x60] sm:$0xff]  ;;  %v68_v18 = vld [vmem:[#allocation5 + $0x58] sm:$0xff]  ;;  %v70_v35 = vld [vmem:[#allocation5 + $0x68] sm:$0xff]  ;;  %p432_p0 = pnand %p431_p13, %p425_p10 }
  0x3f   :  { %306 = vtanh.f32 %v59_v13 }
  0x40   :  { %308 = vtanh.f32 %v60_v14 }
  0x41   :  { %310 = vtanh.f32 %v109_v15  ;;  %v67_v15 = vld [vmem:[#allocation5 + $0x50] sm:$0xff] }
  0x42   :  { %312 = vtanh.f32 %v110_v16  ;;  %v102_v16 = vld [vmem:[#allocation7 + $0x68] sm:$0xff] }
  0x43   :  { %v295_v20 = vpop.eup %294  ;;  %314 = vtanh.f32 %v61_v19  ;;  %v117_v19 = vmul.f32 0.5, %v101_v10 }
  0x44   :  { %v297_v23 = vpop.eup %296  ;;  %v137_v24 = vadd.f32 1.0, %v295_v20  ;;  %316 = vtanh.f32 %v62_v21  ;;  %v118_v20 = vmul.f32 0.5, %v102_v16 }
  0x45   :  { %v299_v26 = vpop.eup %298  ;;  %v138_v27 = vadd.f32 1.0, %v297_v23  ;;  %318 = vtanh.f32 %v111_v22 }
  0x46   :  { %v301_v28 = vpop.eup %300  ;;  %v153_v29 = vmul.f32 0.5, %v137_v24  ;;  %320 = vtanh.f32 %v112_v25 }
  0x47   :  { %v303_v30 = vpop.eup %302  ;;  %v154_v31 = vmul.f32 0.5, %v138_v27  ;;  %322 = vtanh.f32 %v63_v39  ;;  %v103_v27 = vld [vmem:[#allocation7 + $0x70] sm:$0xff] }
  0x48   :  { %v305_v32 = vpop.eup %304  ;;  %v169_v33 = vmul.f32 %v299_v26, %v153_v29  ;;  %v139_v34 = vadd.f32 1.0, %v303_v30  ;;  %324 = vtanh.f32 %v64_v46 }
  0x49   :  { %v307_v36 = vpop.eup %306  ;;  %v170_v37 = vmul.f32 %v301_v28, %v154_v31  ;;  %v140_v38 = vadd.f32 1.0, %v305_v32  ;;  %326 = vtanh.f32 %v113_v47  ;;  %v69_v32 = vld [vmem:[#allocation5 + $0x60] sm:$0xff] }
  0x4a   :  { %v309_v41 = vpop.eup %308  ;;  %v155_v42 = vmul.f32 0.5, %v139_v34  ;;  %328 = vtanh.f32 %v114_v49  ;;  %v71_v49 = vld [vmem:[#allocation5 + $0x70] sm:$0xff] }
  0x4b   :  { %v311_v43 = vpop.eup %310  ;;  %v188_v44 = vpack.c.bf16 %v170_v37, %v169_v33  ;;  %v156_v45 = vmul.f32 0.5, %v140_v38  ;;  %330 = vtanh.f32 %v65_v61  ;;  %v104_v33 = vld [vmem:[#allocation7 + $0x78] sm:$0xff] }
  0x4c   :  { %v313_v48 = vpop.eup %312  ;;  %v171_v50 = vmul.f32 %v307_v36, %v155_v42  ;;  %v141_v52 = vadd.f32 1.0, %v311_v43  ;;  %332 = vtanh.f32 %v66_v1  ;;  %v119_v36 = vmul.f32 0.5, %v103_v27 }
  0x4d   :  { %267 = vmatpush3.bf16.xpose.msra.mxu0 %v188_v44  ;;  %v172_v51 = vmul.f32 %v309_v41, %v156_v45  ;;  %v142_v53 = vadd.f32 1.0, %v313_v48  ;;  %v315_v54 = vpop.eup %314  ;;  %334 = vtanh.f32 %v115_v2  ;;  %v120_v37 = vmul.f32 0.5, %v104_v33 }
  0x4e   :  { %268 = vmatprep.subr.bf16.mxu0 %v457_v0  ;;  %v317_v55 = vpop.eup %316  ;;  %v157_v59 = vmul.f32 0.5, %v141_v52  ;;  %336 = vtanh.f32 %v116_v3 }
  0x4f   :  { %v319_v57 = vpop.eup %318  ;;  %v189_v58 = vpack.c.bf16 %v172_v51, %v171_v50  ;;  %v158_v60 = vmul.f32 0.5, %v142_v53  ;;  %338 = vtanh.f32 %v67_v15 }
  0x50   :  { %v321_v63 = vpop.eup %320  ;;  %v173_v4 = vmul.f32 %v315_v54, %v157_v59  ;;  %v143_v6 = vadd.f32 1.0, %v319_v57  ;;  %340 = vtanh.f32 %v68_v18  ;;  %v72_v54 = vld [vmem:[#allocation5 + $0x78] sm:$0xff] }
  0x51   :  { %v174_v5 = vmul.f32 %v317_v55, %v158_v60  ;;  %v144_v7 = vadd.f32 1.0, %v321_v63  ;;  %v323_v8 = vpop.eup %322  ;;  %342 = vtanh.f32 %v117_v19 }
  0x52   :  { %v325_v9 = vpop.eup %324  ;;  %v159_v13 = vmul.f32 0.5, %v143_v6  ;;  %344 = vtanh.f32 %v118_v20 }
  0x53   :  { %v327_v11 = vpop.eup %326  ;;  %v190_v12 = vpack.c.bf16 %v174_v5, %v173_v4  ;;  %v160_v14 = vmul.f32 0.5, %v144_v7  ;;  %346 = vtanh.f32 %v69_v32 }
  0x54   :  { %v329_v17 = vpop.eup %328  ;;  %v175_v21 = vmul.f32 %v323_v8, %v159_v13  ;;  %v145_v23 = vadd.f32 1.0, %v327_v11  ;;  %348 = vtanh.f32 %v70_v35  ;;  %v185_v11 = vld [vmem:[#allocation2] sm:$0xff] }
  0x55   :  { %269 = vmatpush3.bf16.xpose.msra.mxu0 %v189_v58  ;;  %v176_v22 = vmul.f32 %v325_v9, %v160_v14  ;;  %v146_v24 = vadd.f32 1.0, %v329_v17  ;;  %v331_v25 = vpop.eup %330  ;;  %350 = vtanh.f32 %v119_v36 }
  0x56   :  { %270 = vmatprep.subr.bf16.mxu0 %v457_v0  ;;  %v333_v26 = vpop.eup %332  ;;  %v161_v30 = vmul.f32 0.5, %v145_v23  ;;  %352 = vtanh.f32 %v120_v37 }
  0x57   :  { %v335_v28 = vpop.eup %334  ;;  %v191_v29 = vpack.c.bf16 %v176_v22, %v175_v21  ;;  %v162_v31 = vmul.f32 0.5, %v146_v24  ;;  %354 = vtanh.f32 %v71_v49 }
  0x58   :  { %v337_v34 = vpop.eup %336  ;;  %v177_v38 = vmul.f32 %v331_v25, %v161_v30  ;;  %v147_v40 = vadd.f32 1.0, %v335_v28  ;;  %356 = vtanh.f32 %v72_v54 }
  0x59   :  { %v178_v39 = vmul.f32 %v333_v26, %v162_v31  ;;  %v148_v41 = vadd.f32 1.0, %v337_v34  ;;  %v339_v42 = vpop.eup %338 }
  0x5a   :  { %v341_v43 = vpop.eup %340  ;;  %v163_v46 = vmul.f32 0.5, %v147_v40 }
  0x5b   :  { %v343_v44 = vpop.eup %342  ;;  %v192_v45 = vpack.c.bf16 %v178_v39, %v177_v38  ;;  %v164_v47 = vmul.f32 0.5, %v148_v41 }
  0x5c   :  { %v345_v48 = vpop.eup %344  ;;  %v179_v50 = vmul.f32 %v339_v42, %v163_v46  ;;  %v149_v52 = vadd.f32 1.0, %v343_v44 }
  0x5d   :  { %271 = vmatpush3.bf16.xpose.msra.mxu0 %v190_v12  ;;  %v180_v51 = vmul.f32 %v341_v43, %v164_v47  ;;  %v150_v53 = vadd.f32 1.0, %v345_v48  ;;  %v347_v55 = vpop.eup %346  ;;  %v186_v12 = vld [vmem:[#allocation2 + $0x8] sm:$0xff] }
  0x5e   :  { %272 = vmatprep.subr.bf16.mxu0 %v457_v0  ;;  %v349_v56 = vpop.eup %348  ;;  %v165_v59 = vmul.f32 0.5, %v149_v52  ;;  %v187_v13 = vpack.c.bf16 %v186_v12, %v185_v11 }
  0x5f   :  { %v351_v57 = vpop.eup %350  ;;  %v193_v58 = vpack.c.bf16 %v180_v51, %v179_v50  ;;  %v166_v60 = vmul.f32 0.5, %v150_v53 }
  0x60   :  { %v353_v61 = vpop.eup %352  ;;  %v181_v62 = vmul.f32 %v347_v55, %v165_v59  ;;  %v151_v1 = vadd.f32 1.0, %v351_v57 }
  0x61   :  { %v182_v63 = vmul.f32 %v349_v56, %v166_v60  ;;  %v152_v2 = vadd.f32 1.0, %v353_v61  ;;  %v355_v3 = vpop.eup %354 }
  0x62   :  { %v167_v5 = vmul.f32 0.5, %v151_v1  ;;  %v357_v7 = vpop.eup %356 }
  0x63   :  { %v194_v4 = vpack.c.bf16 %v182_v63, %v181_v62  ;;  %v168_v6 = vmul.f32 0.5, %v152_v2 }
  0x64   :  { %v183_v8 = vmul.f32 %v355_v3, %v167_v5 }
  0x65   :  { %273 = vmatpush3.bf16.xpose.msra.mxu0 %v191_v29  ;;  %v184_v9 = vmul.f32 %v357_v7, %v168_v6 }
  0x66   :  { %274 = vmatprep.subr.bf16.mxu0 %v457_v0 }
  0x67   :  { %v195_v10 = vpack.c.bf16 %v184_v9, %v183_v8 }
  0x6d   :  { %275 = vmatpush3.bf16.xpose.msra.mxu0 %v192_v45 }
  0x6e   :  { %276 = vmatprep.subr.bf16.mxu0 %v457_v0 }
  0x75   :  { %277 = vmatpush3.bf16.xpose.msra.mxu0 %v193_v58 }
  0x76   :  { %278 = vmatprep.subr.bf16.mxu0 %v457_v0 }
  0x7d   :  { %279 = vmatpush3.bf16.xpose.msra.mxu0 %v194_v4 }
  0x7e   :  { %280 = vmatprep.subr.bf16.mxu0 %v457_v0 }
  0x85   :  { %281 = vmatpush3.bf16.xpose.msra.mxu0 %v195_v10 }
  0x8c   :  { %283 = vmatmul.mubr.bf16.vlgmr.msra.gmra.mrb[0].mxu0 %v187_v13 }
 0x15f   :  { %v230_v14 = vpop.f32.mrb[0].mxu0 }
 0x160   :  { %237 = vst [vmem:[#allocation8] sm:$0xff] %v230_v14  ;;  %v284_v15 = vpop.f32.mrb[1].mxu0 }
 0x161   :  { %v233_v16 = vpop.f32.mrb[2].mxu0 }
 0x162   :  { %238 = vst [vmem:[#allocation8 + $0x8] sm:$0xff] %v233_v16  ;;  %v285_v17 = vpop.f32.mrb[3].mxu0 }
 0x163   :  { %435 = shalt.err (!%p432_p0)
}
 0x164   :  { %s436_s27 = scalar_lea.hbm %s559_s3, 256 }
 0x165   :  { %p437_p1 = scmp.ne.s32.totalorder %s559_s3, %s436_s27  ;;  %p440_p2 = scmp.lt.u32.totalorder %s436_s27, %s559_s3 }
 0x167   :  { %p442_p3 = pnand %p440_p2, %p437_p1 }
 0x169   :  { %445 = shalt.err (!%p442_p3)
}
 0x16a   :  { %250 = dma.vmem_to_hbm [thread:$0]  %s245_s21, 256, %s559_s3, [#allocation4], %s454_s24, %s454_s24, %s455_s25  }
 0x16b   :  { %450 = dma.done.wait [#allocation4], 256  }
 0x16c   :  { %451 = vsyncadd [#allocation4], 4294967040 }
 0x16d   :  { %254 = vsyncpa [#allocation3], 1 }
 0x16e   :  { %255 = vsyncpa [#allocation6], 1 }
 0x16f   :  { %256 = vsyncpa [#allocation4], 1 }

</bundles_post_ra>
